<compile_context>
chip_gen: v5e
topology: v5e:2x2
jax: 0.10.0
libtpu: 0.0.40
codegen_flags: <defaults>
</compile_context>

<pallas_src>
import functools

import jax
import jax.numpy as jnp
from jax.experimental import pallas as pl
from jax.experimental.pallas import tpu as pltpu


def _round_up(x, m):
    return (x + m - 1) // m * m


def _mlp_kernel(*refs, num_layers, compute_dtype):
    """refs = (x_ref, w0, b0, ..., w_{L-1}, b_{L-1}, out_ref).

    x_ref:   (10, TB)   feature-major batch tile, compute_dtype.
    w_l:     (out, in)  PyTorch-native weight layout, compute_dtype (pre-cast).
    b_l:     (out, 1)   bias column, f32.
    out_ref: (1, TB)    lane-dense sigmoid outputs (batch on the lane axis).
    """
    x_ref = refs[0]
    out_ref = refs[-1]
    param_refs = refs[1:-1]

    h = x_ref[...]                                       # (10, TB) compute_dtype
    for layer in range(num_layers):
        w = param_refs[2 * layer][...]                   # (out, in) compute_dtype
        b = param_refs[2 * layer + 1][...]               # (out, 1)  f32
        # h[o, m] = sum_k w[o, k] * h[k, m]  (same math as nn.Linear: x @ W.T + b)
        h = jnp.dot(w, h, preferred_element_type=jnp.float32) + b
        if layer < num_layers - 1:
            # TODO(synk): active_func is hard-coded to ReLU; other activations
            # would need a small switch here.
            h = jnp.maximum(h, 0.0).astype(compute_dtype)  # ReLU, recast for next MXU pass
        else:
            h = jax.nn.sigmoid(h)                          # nn.Sigmoid() output, f32
    out_ref[...] = h.astype(out_ref.dtype)                 # (1, TB), lane-dense


def _mlp_xla(x, params):
    """Plain fused-XLA forward (small-batch fast path and reference)."""
    h = x
    for i, (w, b) in enumerate(params):
        h = h @ w.T + b.reshape(1, -1)
        if i < len(params) - 1:
            h = jnp.maximum(h, 0.0)
        else:
            h = jax.nn.sigmoid(h)
    return h


mlp_reference = _mlp_xla


def mlp_forward(x, params, *, block_batch=16384, compute_dtype=jnp.bfloat16,
                min_pallas_batch=512):
    """Run the whole MLP as one fused, batch-tiled Pallas TPU kernel.

    x:      (B, 10) float32
    params: list of (W, b) with W (out, in) [PyTorch layout], b (out, 1)
    block_batch: target rows per grid step (the actual tile is an even,
        128-aligned split of B to minimize ragged-tail waste).
    compute_dtype: MXU input dtype; bf16 (default) is MXU-native on
        v5e/v6e/v7x and cuts MXU passes ~3x vs f32.  Accumulation stays f32.
        Pass jnp.float32 for bit-close parity with the PyTorch module.
    min_pallas_batch: below this batch size the plain fused-XLA path is used
        (kernel launch + DMA setup would dominate completely).
    """
    num_layers = len(params)
    batch, feat_in = x.shape

    # Small-batch fast path: bypass pallas_call entirely.
    if batch < min_pallas_batch:
        return _mlp_xla(x, params)

    # ---- tile selection ----------------------------------------------------
    num_tiles = max(pl.cdiv(batch, block_batch), 1)
    # v7x has 2 TensorCores per chip: keep the "parallel" grid axis shardable
    # for big batches (negligible extra step cost on 1-TC v5e/v6e).
    if num_tiles == 1 and batch >= 4096:
        num_tiles = 2
    tb = _round_up(pl.cdiv(batch, num_tiles), 128)       # even 128-aligned split
    b_pad = tb * num_tiles

    # ---- feature-major, compute-dtype input slab ---------------------------
    # One fused XLA pass (transpose + cast + optional tail pad).  Keeps the
    # batch on the 128-wide lane axis inside the kernel.
    xt = x.T.astype(compute_dtype)                       # (10, B)
    if b_pad != batch:
        xt = jnp.pad(xt, ((0, 0), (0, b_pad - batch)))   # tail-tile padding only

    # Weights pre-cast once here (constant index_map -> DMA'd once and
    # VMEM-resident across grid steps, so no per-step VPU cast in the kernel).
    # Note: a second pipeline buffer for these ~6 KB params is dead weight, but
    # we skip pl.Buffered(1) hygiene to keep lowering maximally portable.
    flat_params = []
    in_specs = [pl.BlockSpec((feat_in, tb), lambda i: (0, i))]
    for w, b in params:
        flat_params.append(w.astype(compute_dtype))
        flat_params.append(b.astype(jnp.float32))
        in_specs.append(pl.BlockSpec(w.shape, lambda i: (0, 0)))
        in_specs.append(pl.BlockSpec(b.shape, lambda i: (0, 0)))

    out_specs = pl.BlockSpec((1, tb), lambda i: (0, i))

    flops = 2 * batch * sum(w.shape[0] * w.shape[1] for w, _ in params)
    param_bytes = sum(int(p.size) * p.dtype.itemsize for p in flat_params)
    cost = pl.CostEstimate(
        flops=flops,
        transcendentals=2 * batch,                       # sigmoid ≈ exp + recip per row
        bytes_accessed=int(xt.size) * xt.dtype.itemsize + b_pad * 4 + param_bytes)

    kernel = functools.partial(_mlp_kernel, num_layers=num_layers,
                               compute_dtype=compute_dtype)

    out = pl.pallas_call(
        kernel,
        out_shape=jax.ShapeDtypeStruct((1, b_pad), jnp.float32),
        grid=(num_tiles,),
        in_specs=in_specs,
        out_specs=out_specs,
        compiler_params=pltpu.CompilerParams(
            # Parallel batch axis -> shards grid steps across v7x's two TCs.
            dimension_semantics=("parallel",),
            # Headroom for large tiles on v5e/v6e; actual usage at TB=16384 is
            # only a few MiB, comfortably inside v7x's 64 MiB VMEM as well.
            vmem_limit_bytes=64 * 1024 * 1024),
        cost_estimate=cost,
    )(xt, *flat_params)

    # (1, B_pad) lane-dense row -> (B, 1) column, dropping tail padding.
    return out[0, :batch].reshape(batch, 1)


def init_params(node_num, key):
    """Deterministic params matching nn.Linear shapes, PyTorch (out, in) layout.

    Layer sizes (PyTorch Model.__init__):
      Linear(10, node_num[0][0]),
      Linear(l[0], l[1]) for l in node_num,
      Linear(node_num[-1][-1], 1)
    """
    dims = [(10, node_num[0][0])]
    for layer in node_num:
        dims.append((layer[0], layer[1]))
    dims.append((node_num[-1][-1], 1))

    params = []
    for fan_in, fan_out in dims:
        key, kw, kb = jax.random.split(key, 3)
        bound = 1.0 / (fan_in ** 0.5)
        w = jax.random.uniform(kw, (fan_out, fan_in), jnp.float32, -bound, bound)
        b = jax.random.uniform(kb, (fan_out, 1), jnp.float32, -bound, bound)
        params.append((w, b))
    return params


if __name__ == "__main__":
    # Model(node_num=[[32, 32], [32, 16]], active_func=ReLU)
    node_num = [[32, 32], [32, 16]]

    key = jax.random.PRNGKey(0)
    key, kx, kx2, kx3 = jax.random.split(key, 4)
    params = init_params(node_num, key)

    # 1) Tiny batch consistent with the module -> small-batch fast path (XLA).
    x_small = jax.random.normal(kx, (8, 10), dtype=jnp.float32)
    out_small = jax.block_until_ready(mlp_forward(x_small, params))
    assert out_small.shape == (8, 1)
    assert jnp.allclose(out_small, mlp_reference(x_small, params),
                        atol=1e-5, rtol=1e-5)

    # 2) Force the Pallas path at a small, unaligned batch (single tile + pad),
    #    f32 compute for bit-close parity.
    x_mid = jax.random.normal(kx2, (300, 10), dtype=jnp.float32)
    out_mid = jax.block_until_ready(
        mlp_forward(x_mid, params, compute_dtype=jnp.float32, min_pallas_batch=0))
    assert out_mid.shape == (300, 1)
    assert jnp.allclose(out_mid, mlp_reference(x_mid, params),
                        atol=1e-5, rtol=1e-5)

    # 3) Multi-tile + ragged-tail Pallas path, f32 compute.
    x_big = jax.random.normal(kx3, (2100, 10), dtype=jnp.float32)
    ref_big = mlp_reference(x_big, params)
    out_big = jax.block_until_ready(
        mlp_forward(x_big, params, block_batch=1024, compute_dtype=jnp.float32))
    assert out_big.shape == (2100, 1)
    assert jnp.allclose(out_big, ref_big, atol=1e-5, rtol=1e-5)

    # 4) Default bf16-MXU path (recommended on v6e/v7x) -> relaxed tolerance.
    out_bf16 = jax.block_until_ready(mlp_forward(x_big, params, block_batch=1024))
    assert out_bf16.shape == (2100, 1)
    assert jnp.allclose(out_bf16, ref_big, atol=3e-2, rtol=3e-2)

    print("KERNEL_OK")
</pallas_src>

<mosaic_0001>
module attributes {stable_mosaic.version = 11 : i64} {
  func.func @_mlp_kernel(%arg0: i32, %arg1: memref<10x384xf32, #tpu.memory_space<vmem>>, %arg2: memref<32x10xf32, #tpu.memory_space<vmem>>, %arg3: memref<32x1xf32, #tpu.memory_space<vmem>>, %arg4: memref<32x32xf32, #tpu.memory_space<vmem>>, %arg5: memref<32x1xf32, #tpu.memory_space<vmem>>, %arg6: memref<16x32xf32, #tpu.memory_space<vmem>>, %arg7: memref<16x1xf32, #tpu.memory_space<vmem>>, %arg8: memref<1x16xf32, #tpu.memory_space<vmem>>, %arg9: memref<1x1xf32, #tpu.memory_space<vmem>>, %arg10: memref<1x384xf32, #tpu.memory_space<vmem>>) attributes {dimension_semantics = [#tpu.dimension_semantics<parallel>], iteration_bounds = array<i64: 1>, scalar_prefetch = 0 : i64, scratch_operands = 0 : i64, tpu.core_type = #tpu.core_type<tc>, window_params = [{transform_indices = @transform_0, window_bounds = array<i64: 10, 384>}, {pipeline_mode = #tpu.pipeline_mode<synchronous>, transform_indices = @transform_1, window_bounds = array<i64: 32, 10>}, {pipeline_mode = #tpu.pipeline_mode<synchronous>, transform_indices = @transform_2, window_bounds = array<i64: 32, 1>}, {pipeline_mode = #tpu.pipeline_mode<synchronous>, transform_indices = @transform_3, window_bounds = array<i64: 32, 32>}, {pipeline_mode = #tpu.pipeline_mode<synchronous>, transform_indices = @transform_4, window_bounds = array<i64: 32, 1>}, {pipeline_mode = #tpu.pipeline_mode<synchronous>, transform_indices = @transform_5, window_bounds = array<i64: 16, 32>}, {pipeline_mode = #tpu.pipeline_mode<synchronous>, transform_indices = @transform_6, window_bounds = array<i64: 16, 1>}, {pipeline_mode = #tpu.pipeline_mode<synchronous>, transform_indices = @transform_7, window_bounds = array<i64: 1, 16>}, {pipeline_mode = #tpu.pipeline_mode<synchronous>, transform_indices = @transform_8, window_bounds = array<i64: 1, 1>}, {transform_indices = @transform_9, window_bounds = array<i64: 1, 384>}]} {
    %c0 = arith.constant 0 : index
    %c0_0 = arith.constant 0 : index
    %0 = vector.load %arg1[%c0, %c0_0] : memref<10x384xf32, #tpu.memory_space<vmem>>, vector<10x384xf32>
    %c0_1 = arith.constant 0 : index
    %c0_2 = arith.constant 0 : index
    %1 = vector.load %arg2[%c0_1, %c0_2] : memref<32x10xf32, #tpu.memory_space<vmem>>, vector<32x10xf32>
    %c0_3 = arith.constant 0 : index
    %c0_4 = arith.constant 0 : index
    %2 = vector.load %arg3[%c0_3, %c0_4] : memref<32x1xf32, #tpu.memory_space<vmem>>, vector<32x1xf32>
    %cst = arith.constant dense<0.000000e+00> : vector<32x384xf32>
    %3 = tpu.matmul %1, %0, %cst {dimension_numbers = #tpu.dot_dimension_numbers<[1], [0], [0], [1], [0, 0, 1, 1], [], []>} : vector<32x10xf32>, vector<10x384xf32>, vector<32x384xf32> -> vector<32x384xf32>
    %4 = vector.broadcast %2 : vector<32x1xf32> to vector<32x384xf32>
    %5 = arith.addf %3, %4 : vector<32x384xf32>
    %cst_5 = arith.constant 0.000000e+00 : f32
    %6 = vector.broadcast %cst_5 : f32 to vector<32x384xf32>
    %7 = arith.maximumf %5, %6 : vector<32x384xf32>
    %c0_6 = arith.constant 0 : index
    %c0_7 = arith.constant 0 : index
    %8 = vector.load %arg4[%c0_6, %c0_7] : memref<32x32xf32, #tpu.memory_space<vmem>>, vector<32x32xf32>
    %c0_8 = arith.constant 0 : index
    %c0_9 = arith.constant 0 : index
    %9 = vector.load %arg5[%c0_8, %c0_9] : memref<32x1xf32, #tpu.memory_space<vmem>>, vector<32x1xf32>
    %cst_10 = arith.constant dense<0.000000e+00> : vector<32x384xf32>
    %10 = tpu.matmul %8, %7, %cst_10 {dimension_numbers = #tpu.dot_dimension_numbers<[1], [0], [0], [1], [0, 0, 1, 1], [], []>} : vector<32x32xf32>, vector<32x384xf32>, vector<32x384xf32> -> vector<32x384xf32>
    %11 = vector.broadcast %9 : vector<32x1xf32> to vector<32x384xf32>
    %12 = arith.addf %10, %11 : vector<32x384xf32>
    %cst_11 = arith.constant 0.000000e+00 : f32
    %13 = vector.broadcast %cst_11 : f32 to vector<32x384xf32>
    %14 = arith.maximumf %12, %13 : vector<32x384xf32>
    %c0_12 = arith.constant 0 : index
    %c0_13 = arith.constant 0 : index
    %15 = vector.load %arg6[%c0_12, %c0_13] : memref<16x32xf32, #tpu.memory_space<vmem>>, vector<16x32xf32>
    %c0_14 = arith.constant 0 : index
    %c0_15 = arith.constant 0 : index
    %16 = vector.load %arg7[%c0_14, %c0_15] : memref<16x1xf32, #tpu.memory_space<vmem>>, vector<16x1xf32>
    %cst_16 = arith.constant dense<0.000000e+00> : vector<16x384xf32>
    %17 = tpu.matmul %15, %14, %cst_16 {dimension_numbers = #tpu.dot_dimension_numbers<[1], [0], [0], [1], [0, 0, 1, 1], [], []>} : vector<16x32xf32>, vector<32x384xf32>, vector<16x384xf32> -> vector<16x384xf32>
    %18 = vector.broadcast %16 : vector<16x1xf32> to vector<16x384xf32>
    %19 = arith.addf %17, %18 : vector<16x384xf32>
    %cst_17 = arith.constant 0.000000e+00 : f32
    %20 = vector.broadcast %cst_17 : f32 to vector<16x384xf32>
    %21 = arith.maximumf %19, %20 : vector<16x384xf32>
    %c0_18 = arith.constant 0 : index
    %c0_19 = arith.constant 0 : index
    %22 = vector.load %arg8[%c0_18, %c0_19] : memref<1x16xf32, #tpu.memory_space<vmem>>, vector<1x16xf32>
    %c0_20 = arith.constant 0 : index
    %c0_21 = arith.constant 0 : index
    %23 = vector.load %arg9[%c0_20, %c0_21] : memref<1x1xf32, #tpu.memory_space<vmem>>, vector<1x1xf32>
    %cst_22 = arith.constant dense<0.000000e+00> : vector<1x384xf32>
    %24 = tpu.matmul %22, %21, %cst_22 {dimension_numbers = #tpu.dot_dimension_numbers<[1], [0], [0], [1], [0, 0, 1, 1], [], []>} : vector<1x16xf32>, vector<16x384xf32>, vector<1x384xf32> -> vector<1x384xf32>
    %25 = vector.broadcast %23 : vector<1x1xf32> to vector<1x384xf32>
    %26 = arith.addf %24, %25 : vector<1x384xf32>
    %27 = arith.negf %26 : vector<1x384xf32>
    %28 = math.exp %27 : vector<1x384xf32>
    %cst_23 = arith.constant 1.000000e+00 : f32
    %29 = vector.broadcast %cst_23 : f32 to vector<1x384xf32>
    %30 = arith.addf %29, %28 : vector<1x384xf32>
    %31 = arith.divf %29, %30 : vector<1x384xf32>
    %c0_24 = arith.constant 0 : index
    %c0_25 = arith.constant 0 : index
    %32 = vector.load %arg10[%c0_24, %c0_25] : memref<1x384xf32, #tpu.memory_space<vmem>>, vector<1x384xf32>
    tpu.vector_store %arg10[%c0_24, %c0_25], %31 {strides = array<i32>} : memref<1x384xf32, #tpu.memory_space<vmem>>, vector<1x384xf32>,
    return
  }
  func.func @transform_0(%arg0: i32) -> (i32, i32) {
    %c0_i32 = arith.constant 0 : i32
    %c0_i32_0 = arith.constant 0 : i32
    return %c0_i32, %arg0 : i32, i32
  }
  func.func @transform_1(%arg0: i32) -> (i32, i32) {
    %c0_i32 = arith.constant 0 : i32
    %c0_i32_0 = arith.constant 0 : i32
    %c0_i32_1 = arith.constant 0 : i32
    return %c0_i32, %c0_i32_0 : i32, i32
  }
  func.func @transform_2(%arg0: i32) -> (i32, i32) {
    %c0_i32 = arith.constant 0 : i32
    %c0_i32_0 = arith.constant 0 : i32
    %c0_i32_1 = arith.constant 0 : i32
    return %c0_i32, %c0_i32_0 : i32, i32
  }
  func.func @transform_3(%arg0: i32) -> (i32, i32) {
    %c0_i32 = arith.constant 0 : i32
    %c0_i32_0 = arith.constant 0 : i32
    %c0_i32_1 = arith.constant 0 : i32
    return %c0_i32, %c0_i32_0 : i32, i32
  }
  func.func @transform_4(%arg0: i32) -> (i32, i32) {
    %c0_i32 = arith.constant 0 : i32
    %c0_i32_0 = arith.constant 0 : i32
    %c0_i32_1 = arith.constant 0 : i32
    return %c0_i32, %c0_i32_0 : i32, i32
  }
  func.func @transform_5(%arg0: i32) -> (i32, i32) {
    %c0_i32 = arith.constant 0 : i32
    %c0_i32_0 = arith.constant 0 : i32
    %c0_i32_1 = arith.constant 0 : i32
    return %c0_i32, %c0_i32_0 : i32, i32
  }
  func.func @transform_6(%arg0: i32) -> (i32, i32) {
    %c0_i32 = arith.constant 0 : i32
    %c0_i32_0 = arith.constant 0 : i32
    %c0_i32_1 = arith.constant 0 : i32
    return %c0_i32, %c0_i32_0 : i32, i32
  }
  func.func @transform_7(%arg0: i32) -> (i32, i32) {
    %c0_i32 = arith.constant 0 : i32
    %c0_i32_0 = arith.constant 0 : i32
    %c0_i32_1 = arith.constant 0 : i32
    return %c0_i32, %c0_i32_0 : i32, i32
  }
  func.func @transform_8(%arg0: i32) -> (i32, i32) {
    %c0_i32 = arith.constant 0 : i32
    %c0_i32_0 = arith.constant 0 : i32
    %c0_i32_1 = arith.constant 0 : i32
    return %c0_i32, %c0_i32_0 : i32, i32
  }
  func.func @transform_9(%arg0: i32) -> (i32, i32) {
    %c0_i32 = arith.constant 0 : i32
    %c0_i32_0 = arith.constant 0 : i32
    return %c0_i32, %arg0 : i32, i32
  }
}

</mosaic_0001>

<bundles_post_ra>
// kernel: tpu_custom_call.1
= control target key start
LH: loop header
LB: loop body
LE: loop exit
PB: predicated region body
PF: predicated region fallthrough
CT: control target
= control target key end

     0   :  { %s849_s0 = inlined_call_operand.vmem [shape: f32[10,384], index: 0, kind: input, shape index: {}]   ;;  %s850_s1 = inlined_call_operand.vmem [shape: f32[32,10], index: 1, kind: input, shape index: {}]   ;;  %s851_s2 = inlined_call_operand.vmem [shape: f32[32,1], index: 2, kind: input, shape index: {}]   ;;  %s852_s3 = inlined_call_operand.vmem [shape: f32[32,32], index: 3, kind: input, shape index: {}]   ;;  %s853_s4 = inlined_call_operand.vmem [shape: f32[32,1], index: 4, kind: input, shape index: {}]   ;;  %s854_s5 = inlined_call_operand.vmem [shape: f32[16,32], index: 5, kind: input, shape index: {}]   ;;  %s855_s6 = inlined_call_operand.vmem [shape: f32[16,1], index: 6, kind: input, shape index: {}]   ;;  %s856_s7 = inlined_call_operand.vmem [shape: f32[1,16], index: 7, kind: input, shape index: {}]   ;;  %s857_s8 = inlined_call_operand.<no memory space> [shape: f32[1,1], index: 8, kind: input, shape index: {}]   ;;  %s858_s9 = inlined_call_operand.hbm [shape: f32[1,384], index: 9, kind: output, shape index: {}]  }
   0x1   :  { %v14_v0 = vstv %s857_s8 }
   0x2   :  { %15 = vst [vmem:[#allocation2] sm:$0x1] %v14_v0 }
   0x3   :  { %v38_v1 = vld [vmem:[%s849_s0 + $0x18] sm:$0x3]  ;;  %vm82_vm0 = vcmask 1041408   ;;  %v39_v2 = vld [vmem:[%s849_s0 + $0x20] sm:$0x3]  ;;  %v36_v5 = vld [vmem:[%s849_s0 + $0x8] sm:$0xff] }
   0x4   :  { %v35_v3 = vld [vmem:[%s849_s0] sm:$0xff]  ;;  %585 = vmatpush.msk.msra.mxu0 %vm82_vm0, %v38_v1  ;;  %590 = vmatpush.msk.msra.mxu1 %vm82_vm0, %v39_v2  ;;  %v40_v4 = vld [vmem:[%s849_s0 + $0x28] sm:$0x3]  ;;  %v37_v6 = vld [vmem:[%s849_s0 + $0x10] sm:$0xff]  ;;  %vm69_vm1 = vcmask 80896   ;;  %v667_v8 = vmov 0  }
   0x5   :  { %595 = vmatpush.msk.msra.mxu2 %vm82_vm0, %v40_v4  ;;  %v41_v7 = vld [vmem:[%s850_s1] sm:$0xff]  ;;  %627 = vset.pattern.permute.xlu1 %v667_v8  ;;  %v46_v9 = vld [vmem:[%s851_s2 + $0x8] sm:$0xff]  ;;  %v48_v10 = vld [vmem:[%s851_s2 + $0x18] sm:$0xff] }
   0x6   :  { %107 = vmatpush.msra.mxu0 %v35_v3  ;;  %136 = vmatpush.msra.mxu1 %v36_v5 }
   0x7   :  { %165 = vmatpush.msra.mxu2 %v37_v6  ;;  %586 = vmatmul.msk.f32.vlgmr.msra.gmra.mxu0 %vm69_vm1, %v41_v7 }
   0x8   :  { %591 = vmatmul.msk.f32.vlgmr.msra.gmra.mxu1 %vm69_vm1, %v41_v7  ;;  %596 = vmatmul.msk.f32.vlgmr.msra.gmra.mxu2 %vm69_vm1, %v41_v7 }
   0x9   :  { %56 = vperm.xlu1 %627, %v46_v9   ;;  %626 = vset.pattern.permute.xlu0 %v667_v8 }
   0xa   :  { %16 = vsyncpa [#allocation4], 0  ;;  %66 = vperm.xlu0 %626, %v48_v10   ;;  %628 = vset.pattern.permute.xlu2 %v667_v8  ;;  %v42_v11 = vld [vmem:[%s850_s1 + $0x8] sm:$0xff]  ;;  %v45_v12 = vld [vmem:[%s851_s2] sm:$0xff]  ;;  %vm219_vm2 = vcmask 261120   ;;  %vm434_vm3 = vcmask 130048  }
   0xb   :  { %v47_v13 = vld [vmem:[%s851_s2 + $0x10] sm:$0xff]  ;;  %v195_v15 = vld [vmem:[%s853_s4] sm:$0xff]  ;;  %v196_v16 = vld [vmem:[%s853_s4 + $0x8] sm:$0xff]  ;;  %vm560_vm14 = vcmask 1040384   ;;  %s576_s16 = sshll.u32 %s858_s9, 4  ;;  %s577_s16 = int_to_ptr.hbm [resolvable:$true] %s576_s16 }
   0xc   :  { %v43_v14 = vld [vmem:[%s850_s1 + $0x10] sm:$0xff]  ;;  %v44_v17 = vld [vmem:[%s850_s1 + $0x18] sm:$0xff]  ;;  %v427_v18 = vld [vmem:[#allocation2] sm:$0x1] }
   0xd   :  { %v333_v19 = vld [vmem:[%s855_s6] sm:$0xff]  ;;  %v198_v57 = vld [vmem:[%s853_s4 + $0x18] sm:$0xff]  ;;  %v192_v62 = vld [vmem:[%s852_s3 + $0x8] sm:$0xff] }
   0xe   :  { %v191_v56 = vld [vmem:[%s852_s3] sm:$0xff]  ;;  %216 = vperm.xlu2 %628, %v198_v57   ;;  %v197_v63 = vld [vmem:[%s853_s4 + $0x10] sm:$0xff]  ;;  %v334_v1 = vld [vmem:[%s855_s6 + $0x8] sm:$0xff] }
   0xf   :  { %587 = vmatmul.msk.f32.gmra.mxu0 %vm69_vm1, %v42_v11  ;;  %v193_v0 = vld [vmem:[%s852_s3 + $0x10] sm:$0xff]  ;;  %v194_v2 = vld [vmem:[%s852_s3 + $0x18] sm:$0xff]  ;;  %v426_v57 = vld [vmem:[%s856_s7] sm:$0x1]  ;;  %s668_s7 = smov [#allocation3]  }
  0x10   :  { %592 = vmatmul.msk.f32.gmra.mxu1 %vm69_vm1, %v42_v11  ;;  %597 = vmatmul.msk.f32.gmra.mxu2 %vm69_vm1, %v42_v11  ;;  %s574_s13 = sshll.u32 %s668_s7, 4  ;;  %s575_s13 = int_to_ptr.vmem [resolvable:$true] %s574_s13 }
  0x11   :  { %51 = vperm.xlu1 %627, %v45_v12  }
  0x12   :  { %61 = vperm.xlu0 %626, %v47_v13  }
  0x16   :  { %211 = vperm.xlu2 %628, %v197_v63  }
  0x17   :  { %588 = vmatmul.msk.f32.gmra.mxu0 %vm69_vm1, %v43_v14 }
  0x18   :  { %593 = vmatmul.msk.f32.gmra.mxu1 %vm69_vm1, %v43_v14  ;;  %598 = vmatmul.msk.f32.gmra.mxu2 %vm69_vm1, %v43_v14 }
  0x19   :  { %201 = vperm.xlu1 %627, %v195_v15  }
  0x1a   :  { %206 = vperm.xlu0 %626, %v196_v16  }
  0x1e   :  { %342 = vperm.xlu2 %628, %v334_v1  }
  0x1f   :  { %589 = vmatmul.msk.f32.gmra.mxu0 %vm69_vm1, %v44_v17 }
  0x20   :  { %594 = vmatmul.msk.f32.gmra.mxu1 %vm69_vm1, %v44_v17  ;;  %599 = vmatmul.msk.f32.gmra.mxu2 %vm69_vm1, %v44_v17 }
  0x21   :  { %430 = vperm.xlu1 %627, %v427_v18  }
  0x22   :  { %337 = vperm.xlu0 %626, %v333_v19  }
  0x68   :  { %v217_v7 = vpop.permute.xlu2 %216 }
  0x70   :  { %v212_v12 = vpop.permute.xlu2 %211 }
  0x7b   :  { %v57_v27 = vpop.permute.xlu1 %56 }
  0x7c   :  { %v67_v25 = vpop.permute.xlu0 %66 }
  0x83   :  { %v52_v36 = vpop.permute.xlu1 %51 }
  0x84   :  { %v109_v20 = vpop.f32.mrf.mxu0  ;;  %v62_v31 = vpop.permute.xlu0 %61 }
  0x85   :  { %v138_v21 = vpop.f32.mrf.mxu1  ;;  %v110_v43 = vadd.f32 %v109_v20, %v52_v36 }
  0x86   :  { %v139_v45 = vadd.f32 %v138_v21, %v52_v36 }
  0x87   :  { %v179_v52 = vmax.f32 %v110_v43, 0.0 }
  0x88   :  { %v180_v53 = vmax.f32 %v139_v45, 0.0 }
  0x8b   :  { %v167_v22 = vpop.f32.mrf.mxu2  ;;  %v202_v20 = vpop.permute.xlu1 %201 }
  0x8c   :  { %v112_v23 = vpop.f32.mrf.mxu0  ;;  %v168_v58 = vadd.f32 %v167_v22, %v52_v36  ;;  %v207_v17 = vpop.permute.xlu0 %206 }
  0x8d   :  { %v141_v24 = vpop.f32.mrf.mxu1  ;;  %v113_v39 = vadd.f32 %v112_v23, %v57_v27 }
  0x8e   :  { %v142_v41 = vadd.f32 %v141_v24, %v57_v27  ;;  %v181_v61 = vmax.f32 %v168_v58, 0.0 }
  0x8f   :  { %v182_v47 = vmax.f32 %v113_v39, 0.0 }
  0x90   :  { %v183_v49 = vmax.f32 %v142_v41, 0.0 }
  0x93   :  { %v170_v26 = vpop.f32.mrf.mxu2 }
  0x94   :  { %v115_v28 = vpop.f32.mrf.mxu0  ;;  %v171_v54 = vadd.f32 %v170_v26, %v57_v27 }
  0x95   :  { %v144_v29 = vpop.f32.mrf.mxu1  ;;  %v116_v33 = vadd.f32 %v115_v28, %v62_v31 }
  0x96   :  { %v145_v37 = vadd.f32 %v144_v29, %v62_v31  ;;  %v184_v60 = vmax.f32 %v171_v54, 0.0 }
  0x97   :  { %v185_v44 = vmax.f32 %v116_v33, 0.0 }
  0x98   :  { %v186_v46 = vmax.f32 %v145_v37, 0.0 }
  0x9b   :  { %v173_v30 = vpop.f32.mrf.mxu2 }
  0x9c   :  { %v118_v32 = vpop.f32.mrf.mxu0  ;;  %v174_v50 = vadd.f32 %v173_v30, %v62_v31  ;;  %v331_v30 = vld [vmem:[%s854_s5] sm:$0xff] }
  0x9d   :  { %v147_v34 = vpop.f32.mrf.mxu1  ;;  %v119_v35 = vadd.f32 %v118_v32, %v67_v25 }
  0x9e   :  { %v148_v38 = vadd.f32 %v147_v34, %v67_v25  ;;  %v187_v59 = vmax.f32 %v174_v50, 0.0 }
  0x9f   :  { %v188_v40 = vmax.f32 %v119_v35, 0.0 }
  0xa0   :  { %v189_v42 = vmax.f32 %v148_v38, 0.0 }
  0xa1   :  { %244 = vmatpush.msra.mxu3 %v188_v40  ;;  %v332_v40 = vld [vmem:[%s854_s5 + $0x8] sm:$0xff] }
  0xa2   :  { %273 = vmatpush.msrb.mxu0 %v189_v42 }
  0xa3   :  { %v176_v48 = vpop.f32.mrf.mxu2  ;;  %245 = vmatpush.msra.mxu3 %v185_v44 }
  0xa4   :  { %v177_v51 = vadd.f32 %v176_v48, %v67_v25  ;;  %274 = vmatpush.msrb.mxu0 %v186_v46  ;;  %v343_v48 = vpop.permute.xlu2 %342 }
  0xa5   :  { %246 = vmatpush.msra.mxu3 %v182_v47  ;;  %v338_v47 = vpop.permute.xlu0 %337 }
  0xa6   :  { %v190_v55 = vmax.f32 %v177_v51, 0.0  ;;  %275 = vmatpush.msrb.mxu0 %v183_v49 }
  0xa7   :  { %247 = vmatpush.msra.mxu3 %v179_v52 }
  0xa8   :  { %276 = vmatpush.msrb.mxu0 %v180_v53  ;;  %302 = vmatpush.msrb.mxu1 %v190_v55 }
  0xa9   :  { %600 = vmatmul.msk.f32.vlgmr.msra.gmra.mxu3 %vm219_vm2, %v191_v56  ;;  %604 = vmatmul.msk.f32.vlgmr.msrb.gmra.mxu0 %vm219_vm2, %v191_v56 }
  0xaa   :  { %303 = vmatpush.msrb.mxu1 %v187_v59 }
  0xac   :  { %304 = vmatpush.msrb.mxu1 %v184_v60 }
  0xae   :  { %305 = vmatpush.msrb.mxu1 %v181_v61 }
  0xaf   :  { %608 = vmatmul.msk.f32.vlgmr.msrb.gmra.mxu1 %vm219_vm2, %v191_v56 }
  0xb1   :  { %601 = vmatmul.msk.f32.gmra.mxu3 %vm219_vm2, %v192_v62  ;;  %605 = vmatmul.msk.f32.gmra.mxu0 %vm219_vm2, %v192_v62 }
  0xb7   :  { %609 = vmatmul.msk.f32.gmra.mxu1 %vm219_vm2, %v192_v62 }
  0xb9   :  { %602 = vmatmul.msk.f32.gmra.mxu3 %vm219_vm2, %v193_v0  ;;  %606 = vmatmul.msk.f32.gmra.mxu0 %vm219_vm2, %v193_v0 }
  0xbf   :  { %610 = vmatmul.msk.f32.gmra.mxu1 %vm219_vm2, %v193_v0 }
  0xc1   :  { %603 = vmatmul.msk.f32.gmra.mxu3 %vm219_vm2, %v194_v2  ;;  %607 = vmatmul.msk.f32.gmra.mxu0 %vm219_vm2, %v194_v2 }
  0xc7   :  { %611 = vmatmul.msk.f32.gmra.mxu1 %vm219_vm2, %v194_v2  ;;  %v431_v2 = vpop.permute.xlu1 %430 }
 0x126   :  { %v278_v3 = vpop.f32.mrf.mxu0 }
 0x127   :  { %v279_v21 = vadd.f32 %v278_v3, %v202_v20  ;;  %v433_v3 = vperm.slane %v431_v2, 0 }
 0x129   :  { %v320_v27 = vmax.f32 %v279_v21, 0.0 }
 0x12c   :  { %v249_v4 = vpop.f32.mrf.mxu3  ;;  %v307_v5 = vpop.f32.mrf.mxu1 }
 0x12d   :  { %v250_v32 = vadd.f32 %v249_v4, %v202_v20  ;;  %v308_v41 = vadd.f32 %v307_v5, %v202_v20 }
 0x12e   :  { %v281_v6 = vpop.f32.mrf.mxu0 }
 0x12f   :  { %v282_v18 = vadd.f32 %v281_v6, %v207_v17  ;;  %v319_v36 = vmax.f32 %v250_v32, 0.0  ;;  %v321_v44 = vmax.f32 %v308_v41, 0.0  ;;  %v564_v41 = vlaneseq }
 0x131   :  { %v323_v24 = vmax.f32 %v282_v18, 0.0 }
 0x134   :  { %v252_v8 = vpop.f32.mrf.mxu3  ;;  %v310_v9 = vpop.f32.mrf.mxu1 }
 0x135   :  { %v253_v28 = vadd.f32 %v252_v8, %v207_v17  ;;  %v311_v38 = vadd.f32 %v310_v9, %v207_v17 }
 0x136   :  { %v284_v10 = vpop.f32.mrf.mxu0 }
 0x137   :  { %v285_v15 = vadd.f32 %v284_v10, %v212_v12  ;;  %v322_v34 = vmax.f32 %v253_v28, 0.0  ;;  %v324_v43 = vmax.f32 %v311_v38, 0.0 }
 0x139   :  { %v326_v22 = vmax.f32 %v285_v15, 0.0 }
 0x13c   :  { %v255_v11 = vpop.f32.mrf.mxu3  ;;  %v313_v13 = vpop.f32.mrf.mxu1 }
 0x13d   :  { %v256_v25 = vadd.f32 %v255_v11, %v212_v12  ;;  %v314_v37 = vadd.f32 %v313_v13, %v212_v12 }
 0x13e   :  { %v287_v14 = vpop.f32.mrf.mxu0 }
 0x13f   :  { %v288_v16 = vadd.f32 %v287_v14, %v217_v7  ;;  %v325_v33 = vmax.f32 %v256_v25, 0.0  ;;  %v327_v42 = vmax.f32 %v314_v37, 0.0 }
 0x141   :  { %v329_v19 = vmax.f32 %v288_v16, 0.0 }
 0x143   :  { %386 = vmatpush.msrb.mxu3 %v329_v19 }
 0x144   :  { %v258_v23 = vpop.f32.mrf.mxu3  ;;  %v316_v31 = vpop.f32.mrf.mxu1 }
 0x145   :  { %v259_v26 = vadd.f32 %v258_v23, %v217_v7  ;;  %387 = vmatpush.msrb.mxu3 %v326_v22  ;;  %v317_v35 = vadd.f32 %v316_v31, %v217_v7 }
 0x147   :  { %v328_v29 = vmax.f32 %v259_v26, 0.0  ;;  %388 = vmatpush.msrb.mxu3 %v323_v24  ;;  %v330_v39 = vmax.f32 %v317_v35, 0.0 }
 0x149   :  { %363 = vmatpush.msrb.mxu2 %v328_v29  ;;  %389 = vmatpush.msrb.mxu3 %v320_v27 }
 0x14a   :  { %614 = vmatmul.msk.f32.vlgmr.msrb.gmra.mxu3 %vm219_vm2, %v331_v30 }
 0x14b   :  { %364 = vmatpush.msrb.mxu2 %v325_v33 }
 0x14d   :  { %365 = vmatpush.msrb.mxu2 %v322_v34 }
 0x14f   :  { %366 = vmatpush.msrb.mxu2 %v319_v36 }
 0x150   :  { %612 = vmatmul.msk.f32.vlgmr.msrb.gmra.mxu2 %vm219_vm2, %v331_v30 }
 0x151   :  { %409 = vmatpush.msra.mxu2 %v330_v39 }
 0x152   :  { %615 = vmatmul.msk.f32.gmra.mxu3 %vm219_vm2, %v332_v40 }
 0x153   :  { %410 = vmatpush.msra.mxu2 %v327_v42 }
 0x155   :  { %411 = vmatpush.msra.mxu2 %v324_v43 }
 0x157   :  { %412 = vmatpush.msra.mxu2 %v321_v44 }
 0x158   :  { %613 = vmatmul.msk.f32.gmra.mxu2 %vm219_vm2, %v332_v40 }
 0x160   :  { %616 = vmatmul.msk.f32.vlgmr.msra.gmra.mxu2 %vm219_vm2, %v331_v30 }
 0x168   :  { %617 = vmatmul.msk.f32.gmra.mxu2 %vm219_vm2, %v332_v40  ;;  %vm566_vm2 = vcmp.lt.s32.totalorder %v564_v41, 384 }
 0x1cd   :  { %v391_v45 = vpop.f32.mrf.mxu3 }
 0x1ce   :  { %v392_v55 = vadd.f32 %v391_v45, %v338_v47 }
 0x1d0   :  { %v421_v60 = vmax.f32 %v392_v55, 0.0 }
 0x1d3   :  { %v368_v46 = vpop.f32.mrf.mxu2 }
 0x1d4   :  { %v369_v51 = vadd.f32 %v368_v46, %v338_v47 }
 0x1d5   :  { %v394_v49 = vpop.f32.mrf.mxu3 }
 0x1d6   :  { %v395_v53 = vadd.f32 %v394_v49, %v343_v48  ;;  %v420_v56 = vmax.f32 %v369_v51, 0.0 }
 0x1d8   :  { %v424_v58 = vmax.f32 %v395_v53, 0.0 }
 0x1db   :  { %v371_v50 = vpop.f32.mrf.mxu2 }
 0x1dc   :  { %v372_v52 = vadd.f32 %v371_v50, %v343_v48 }
 0x1de   :  { %v423_v54 = vmax.f32 %v372_v52, 0.0 }
 0x1e0   :  { %452 = vmatpush.msra.mxu3 %v423_v54 }
 0x1e2   :  { %453 = vmatpush.msra.mxu3 %v420_v56 }
 0x1e3   :  { %v414_v59 = vpop.f32.mrf.mxu2  ;;  %618 = vmatmul.msk.f32.vlgmr.msra.gmra.mxu3 %vm434_vm3, %v426_v57 }
 0x1e4   :  { %472 = vmatpush.msrb.mxu3 %v424_v58  ;;  %v415_v62 = vadd.f32 %v414_v59, %v338_v47 }
 0x1e6   :  { %473 = vmatpush.msrb.mxu3 %v421_v60  ;;  %v422_v1 = vmax.f32 %v415_v62, 0.0 }
 0x1eb   :  { %v417_v61 = vpop.f32.mrf.mxu2  ;;  %619 = vmatmul.msk.f32.vlgmr.msrb.gmra.mxu3 %vm434_vm3, %v426_v57 }
 0x1ec   :  { %v418_v63 = vadd.f32 %v417_v61, %v343_v48 }
 0x1ee   :  { %v425_v0 = vmax.f32 %v418_v63, 0.0 }
 0x1f0   :  { %492 = vmatpush.msra.mxu0 %v425_v0 }
 0x1f2   :  { %493 = vmatpush.msra.mxu0 %v422_v1 }
 0x1f3   :  { %620 = vmatmul.msk.f32.vlgmr.msra.gmra.mxu0 %vm434_vm3, %v426_v57 }
 0x266   :  { %v455_v4 = vpop.f32.mrf.mxu3 }
 0x267   :  { %v456_v5 = vadd.f32 %v455_v4, %v433_v3 }
 0x269   :  { %v621_v6 = vmul.f32 -1.442695, %v456_v5 }
 0x26b   :  { %629 = vpow2.f32 %v621_v6 }
 0x26e   :  { %v475_v7 = vpop.f32.mrf.mxu3 }
 0x26f   :  { %v476_v8 = vadd.f32 %v475_v7, %v433_v3 }
 0x270   :  { %v495_v9 = vpop.f32.mrf.mxu0 }
 0x271   :  { %v630_v10 = vpop.eup %629  ;;  %v622_v11 = vmul.f32 -1.442695, %v476_v8  ;;  %v496_v12 = vadd.f32 %v495_v9, %v433_v3 }
 0x272   :  { %v507_v13 = vadd.f32 1.0, %v630_v10 }
 0x273   :  { %631 = vpow2.f32 %v622_v11  ;;  %v623_v14 = vmul.f32 -1.442695, %v496_v12 }
 0x274   :  { %633 = vrcp.f32 %v507_v13  ;;  %vm515_vm4 = vweird.f32 %v507_v13  ;;  %v519_v33 = vand.u32 2147483647, %v507_v13  ;;  %v521_v34 = vand.u32 2147483648, %v507_v13 }
 0x275   :  { %635 = vpow2.f32 %v623_v14 }
 0x276   :  { %v522_v45 = vor.u32 1.1754944e-38, %v521_v34  ;;  %vm520_vm15 = vcmp.eq.f32.partialorder %v519_v33, 8.507059e+37 }
 0x279   :  { %v632_v15 = vpop.eup %631 }
 0x27a   :  { %v634_v16 = vpop.eup %633  ;;  %v508_v17 = vadd.f32 1.0, %v632_v15 }
 0x27b   :  { %v636_v18 = vpop.eup %635  ;;  %v511_v19 = vmul.f32 %v634_v16, %v507_v13  ;;  %vm516_vm5 = vweird.f32 %v634_v16 }
 0x27c   :  { %637 = vrcp.f32 %v508_v17  ;;  %v509_v20 = vadd.f32 1.0, %v636_v18  ;;  %v536_v28 = vand.u32 2147483648, %v508_v17  ;;  %v534_v29 = vand.u32 2147483647, %v508_v17  ;;  %vm839_vm8 = vmor %vm515_vm4, %vm516_vm5 }
 0x27d   :  { %v512_v21 = vsub.f32 1.0, %v511_v19  ;;  %vm530_vm7 = vweird.f32 %v508_v17 }
 0x27e   :  { %639 = vrcp.f32 %v509_v20  ;;  %v551_v35 = vand.u32 2147483648, %v509_v20  ;;  %v549_v39 = vand.u32 2147483647, %v509_v20  ;;  %v537_v40 = vor.u32 1.1754944e-38, %v536_v28 }
 0x27f   :  { %v513_v24 = vmul.f32 %v634_v16, %v512_v21  ;;  %vm545_vm11 = vweird.f32 %v509_v20  ;;  %vm535_vm12 = vcmp.eq.f32.partialorder %v534_v29, 8.507059e+37 }
 0x280   :  { %v552_v47 = vor.u32 1.1754944e-38, %v551_v35  ;;  %vm550_vm1 = vcmp.eq.f32.partialorder %v549_v39, 8.507059e+37 }
 0x281   :  { %v514_v32 = vadd.f32 %v634_v16, %v513_v24 }
 0x282   :  { %v638_v22 = vpop.eup %637 }
 0x283   :  { %v526_v23 = vmul.f32 %v638_v22, %v508_v17  ;;  %vm531_vm6 = vweird.f32 %v638_v22  ;;  %v518_v42 = vsel %vm839_vm8, %v634_v16, %v514_v32 }
 0x284   :  { %v640_v25 = vpop.eup %639  ;;  %vm532_vm10 = vmor %vm530_vm7, %vm531_vm6  ;;  %v523_v50 = vsel %vm520_vm15, %v522_v45, %v518_v42 }
 0x285   :  { %v527_v26 = vsub.f32 1.0, %v526_v23  ;;  %v541_v27 = vmul.f32 %v640_v25, %v509_v20  ;;  %vm546_vm9 = vweird.f32 %v640_v25 }
 0x286   :  { %vm547_vm13 = vmor %vm545_vm11, %vm546_vm9 }
 0x287   :  { %v528_v30 = vmul.f32 %v638_v22, %v527_v26  ;;  %v542_v31 = vsub.f32 1.0, %v541_v27 }
 0x289   :  { %v529_v37 = vadd.f32 %v638_v22, %v528_v30  ;;  %v543_v38 = vmul.f32 %v640_v25, %v542_v31 }
 0x28b   :  { %v533_v43 = vsel %vm532_vm10, %v638_v22, %v529_v37  ;;  %v544_v44 = vadd.f32 %v640_v25, %v543_v38 }
 0x28c   :  { %v538_v46 = vsel %vm535_vm12, %v537_v40, %v533_v43 }
 0x28d   :  { %v548_v48 = vsel %vm547_vm13, %v640_v25, %v544_v44  ;;  %v558_v49 = vrot.slane %v538_v46, 7 }
 0x28e   :  { %v553_v51 = vsel %vm550_vm1, %v552_v47, %v548_v48 }
 0x28f   :  { %v559_v52 = vrot.slane %v553_v51, 6  ;;  %v561_v53 = vsel %vm560_vm14, %v523_v50, %v558_v49 }
 0x291   :  { %v562_v54 = vsel %vm82_vm0, %v561_v53, %v559_v52 }
 0x292   :  { %568 = vst.msk [vmem:[#allocation3] sm:$0x7] %vm566_vm2, %v562_v54 }
 0x293   :  { %579 = dma.vmem_to_hbm [thread:$0]  %s575_s13, 48, %s577_s16, [#allocation4]  }
 0x294   :  { %665 = dma.done.wait [#allocation4], 48  }
 0x295   :  { %666 = vsyncadd [#allocation4], 4294967248 }
 0x296   :  { %584 = vsyncpa [#allocation4], 1 }

</bundles_post_ra>
